<compile_context>
chip_gen: v7x
topology: tpu7x:2x2x1
jax: 0.10.0
libtpu: 0.0.40
codegen_flags: <defaults>
</compile_context>

<pallas_src>
import numpy as np

import jax
import jax.numpy as jnp
from jax.experimental import pallas as pl
from jax.experimental.pallas import tpu as pltpu

_HI = jax.lax.Precision.HIGHEST


# --------------------------------------------------------------------------------------
# Helpers
# --------------------------------------------------------------------------------------
def _round_up(v, m):
    return ((v + m - 1) // m) * m


def _sigmoid(v):
    return 1.0 / (1.0 + jnp.exp(-v))


def _pad_params(w_t, w_b, u_t, u_b, x_size, h_size, n_ary, hp):
    """Embed the h_size-wide gate blocks into 128-lane-aligned hp-wide gate blocks.

    Padding is block-diagonal zeros, so padded feature columns of h/c stay exactly zero and
    the real columns are bit-identical to the unpadded math.
    """
    wt_p = np.zeros((x_size, 3 * hp), np.float32)
    wb_p = np.zeros((1, 3 * hp), np.float32)
    for g in range(3):
        wt_p[:, g * hp:g * hp + h_size] = np.asarray(w_t[:, g * h_size:(g + 1) * h_size])
        wb_p[:, g * hp:g * hp + h_size] = np.asarray(w_b[:, g * h_size:(g + 1) * h_size])

    ut_p = np.zeros((n_ary * hp, 4 * hp), np.float32)
    ub_p = np.zeros((1, 4 * hp), np.float32)
    for g in range(4):
        ub_p[:, g * hp:g * hp + h_size] = np.asarray(u_b[:, g * h_size:(g + 1) * h_size])
        for k in range(n_ary):
            ut_p[k * hp:k * hp + h_size, g * hp:g * hp + h_size] = np.asarray(
                u_t[k * h_size:(k + 1) * h_size, g * h_size:(g + 1) * h_size])

    return (jnp.asarray(wt_p), jnp.asarray(wb_p), jnp.asarray(ut_p), jnp.asarray(ub_p))


# --------------------------------------------------------------------------------------
# Kernel 1: initial state  (row-tiled, parallel)
# --------------------------------------------------------------------------------------
def _make_init_kernel(hp):
    HP = hp

    def kernel(x_ref, wt_ref, wb_ref, h_ref, c_ref):
        z = jnp.dot(x_ref[...], wt_ref[...], precision=_HI,
                    preferred_element_type=jnp.float32) + wb_ref[...]
        i = _sigmoid(z[:, 0 * HP:1 * HP])
        o = _sigmoid(z[:, 1 * HP:2 * HP])
        u = jnp.tanh(z[:, 2 * HP:3 * HP])
        c0 = i * u
        c_ref[...] = c0
        h_ref[...] = o * jnp.tanh(c0)

    return kernel


# --------------------------------------------------------------------------------------
# Kernel 2: tree walk, one grid step per topological level, h/c resident in VMEM outputs
# --------------------------------------------------------------------------------------
def _make_tree_walk_kernel(hp, n_ary, max_m):
    HP, NARY, MAXM = hp, n_ary, max_m

    def kernel(g_ref, s_ref, h0_ref, c0_ref, ut_ref, ub_ref, h_ref, c_ref):
        step = pl.program_id(0)

        @pl.when(step == 0)
        def _seed():                       # seed resident state with the init-pass results
            h_ref[...] = h0_ref[...]
            c_ref[...] = c0_ref[...]

        h_state = h_ref[...]
        c_state = c_ref[...]
        gmat = g_ref[...]                  # (NARY*MAXM, n_state) one-hot child-gather operator

        # Vectorized child gather on the MXU: h_cat (MAXM, NARY*HP), c_sum (MAXM, HP).
        csum = jnp.zeros((MAXM, HP), jnp.float32)
        hcat_parts = []
        for k in range(NARY):              # NARY is tiny & static; each iteration is a matmul
            gk = gmat[k * MAXM:(k + 1) * MAXM, :]
            hcat_parts.append(jnp.dot(gk, h_state, precision=_HI,
                                      preferred_element_type=jnp.float32))
            csum = csum + jnp.dot(gk, c_state, precision=_HI,
                                  preferred_element_type=jnp.float32)
        h_cat = jnp.concatenate(hcat_parts, axis=1)        # 128-lane-aligned chunks

        # U(h_cat) -> (i, o, u, f) -> (h, c)    (gate slices are whole vregs)
        z = jnp.dot(h_cat, ut_ref[...], precision=_HI,
                    preferred_element_type=jnp.float32) + ub_ref[...]
        i = _sigmoid(z[:, 0 * HP:1 * HP])
        o = _sigmoid(z[:, 1 * HP:2 * HP])
        u = jnp.tanh(z[:, 2 * HP:3 * HP])
        f = _sigmoid(z[:, 3 * HP:4 * HP])
        c_new = i * u + f * csum
        h_new = o * jnp.tanh(c_new)

        # Vectorized scatter: one-hot matmul back to state rows + row-mask blend.
        smat = s_ref[...]                                  # (n_state, MAXM)
        upd = jnp.sum(smat, axis=1, keepdims=True)         # 1.0 on rows updated this level
        keep = 1.0 - upd
        h_ref[...] = h_state * keep + jnp.dot(smat, h_new, precision=_HI,
                                              preferred_element_type=jnp.float32)
        c_ref[...] = c_state * keep + jnp.dot(smat, c_new, precision=_HI,
                                              preferred_element_type=jnp.float32)

    return kernel


# --------------------------------------------------------------------------------------
# Forward pass (mirrors SingleForgetGateTreeLSTM.forward)
# --------------------------------------------------------------------------------------
def single_forget_gate_tree_lstm_forward(x, params, levels, children, *, h_size, n_ary):
    """x: (N, x_size). levels: list of 1-D int arrays, leaves first (topological order).
    children: dict node_id -> list of child ids (len <= n_ary). Returns (h, c) of shape
    (N, h_size), matching the torch module's ndata['h'] / ndata['c']."""
    w_t, w_b, u_t, u_b = params
    n, x_size = x.shape
    hp = _round_up(h_size, 128)                       # per-gate 128-lane alignment

    wt_p, wb_p, ut_p, ub_p = _pad_params(w_t, w_b, u_t, u_b, x_size, h_size, n_ary, hp)

    row_tile = min(128, _round_up(n, 8))
    n_state = _round_up(n, row_tile)
    x_pad = jnp.zeros((n_state, x_size), jnp.float32).at[:n].set(x.astype(jnp.float32))

    const1 = dict(pipeline_mode=pl.Buffered(1))       # single-buffer never-changing operands

    # ---------------- pass 1: initial state ----------------
    init_vmem = 4 * (2 * row_tile * x_size + x_size * 3 * hp + 3 * hp
                     + 2 * 2 * row_tile * hp) + (8 << 20)
    h0, c0 = pl.pallas_call(
        _make_init_kernel(hp),
        grid=(n_state // row_tile,),
        in_specs=[
            pl.BlockSpec((row_tile, x_size), lambda i: (i, 0)),
            pl.BlockSpec((x_size, 3 * hp), lambda i: (0, 0), **const1),
            pl.BlockSpec((1, 3 * hp), lambda i: (0, 0), **const1),
        ],
        out_specs=(pl.BlockSpec((row_tile, hp), lambda i: (i, 0)),
                   pl.BlockSpec((row_tile, hp), lambda i: (i, 0))),
        out_shape=(jax.ShapeDtypeStruct((n_state, hp), jnp.float32),
                   jax.ShapeDtypeStruct((n_state, hp), jnp.float32)),
        compiler_params=pltpu.CompilerParams(
            dimension_semantics=("parallel",),
            vmem_limit_bytes=int(min(init_vmem, 64 << 20))),
    )(x_pad, wt_p, wb_p)

    n_reduce = len(levels) - 1
    if n_reduce == 0:
        return h0[:n, :h_size], c0[:n, :h_size]

    # ---- per-level one-hot gather / scatter operators (host-precomputed, streamed per level) ----
    max_m = _round_up(max(len(lv) for lv in levels[1:]), 8)
    gmat = np.zeros((n_reduce, n_ary * max_m, n_state), np.float32)
    smat = np.zeros((n_reduce, n_state, max_m), np.float32)
    for li, level in enumerate(levels[1:]):
        for r, node in enumerate(level):
            node = int(node)
            smat[li, node, r] = 1.0
            ch = list(children[node])
            assert len(ch) <= n_ary
            for k, cid in enumerate(ch):
                gmat[li, k * max_m + r, int(cid)] = 1.0

    # ---------------- pass 2: tree walk ----------------
    walk_vmem = 4 * (2 * (n_ary * max_m * n_state + n_state * max_m)   # G/S (double-buffered)
                     + 2 * n_state * hp                                 # h0/c0 seeds (single)
                     + n_ary * hp * 4 * hp + 4 * hp                     # U^T, bias (single)
                     + 2 * n_state * hp) + (8 << 20)                    # resident h/c outputs
    h_full, c_full = pl.pallas_call(
        _make_tree_walk_kernel(hp, n_ary, max_m),
        grid=(n_reduce,),
        in_specs=[
            pl.BlockSpec((None, n_ary * max_m, n_state), lambda s: (s, 0, 0)),
            pl.BlockSpec((None, n_state, max_m), lambda s: (s, 0, 0)),
            pl.BlockSpec((n_state, hp), lambda s: (0, 0), **const1),
            pl.BlockSpec((n_state, hp), lambda s: (0, 0), **const1),
            pl.BlockSpec((n_ary * hp, 4 * hp), lambda s: (0, 0), **const1),
            pl.BlockSpec((1, 4 * hp), lambda s: (0, 0), **const1),
        ],
        out_specs=(pl.BlockSpec((n_state, hp), lambda s: (0, 0)),
                   pl.BlockSpec((n_state, hp), lambda s: (0, 0))),
        out_shape=(jax.ShapeDtypeStruct((n_state, hp), jnp.float32),
                   jax.ShapeDtypeStruct((n_state, hp), jnp.float32)),
        compiler_params=pltpu.CompilerParams(
            dimension_semantics=("arbitrary",),
            vmem_limit_bytes=int(min(walk_vmem, 64 << 20))),
    )(jnp.asarray(gmat), jnp.asarray(smat), h0, c0, ut_p, ub_p)

    return h_full[:n, :h_size], c_full[:n, :h_size]


# --------------------------------------------------------------------------------------
# Pure-numpy (float64) reference for the correctness check
# --------------------------------------------------------------------------------------
def _reference_forward_np(x, params, levels, children, *, h_size, n_ary):
    w_t, w_b, u_t, u_b = [np.asarray(p, np.float64) for p in params]
    x = np.asarray(x, np.float64)
    sig = lambda v: 1.0 / (1.0 + np.exp(-v))

    z = x @ w_t + w_b[0]
    i, o, u = z[:, :h_size], z[:, h_size:2 * h_size], z[:, 2 * h_size:3 * h_size]
    c = sig(i) * np.tanh(u)
    h = sig(o) * np.tanh(c)

    for level in levels[1:]:
        upd_h, upd_c = {}, {}
        for node in level:
            node = int(node)
            ch = [int(c_) for c_ in children[node]]
            hc = np.zeros((n_ary * h_size,), np.float64)
            csum = np.zeros((h_size,), np.float64)
            for k, cid in enumerate(ch):
                hc[k * h_size:(k + 1) * h_size] = h[cid]
                csum += c[cid]
            zz = hc @ u_t + u_b[0]
            ii, oo, uu, ff = (zz[:h_size], zz[h_size:2 * h_size],
                              zz[2 * h_size:3 * h_size], zz[3 * h_size:])
            cn = sig(ii) * np.tanh(uu) + sig(ff) * csum
            upd_h[node] = sig(oo) * np.tanh(cn)
            upd_c[node] = cn
        for node, v in upd_h.items():
            h[node] = v
        for node, v in upd_c.items():
            c[node] = v
    return h, c


# --------------------------------------------------------------------------------------
# Main
# --------------------------------------------------------------------------------------
if __name__ == "__main__":
    x_size, h_size, n_ary = 16, 32, 2

    # Small synthetic tree (6 nodes), topological levels leaves-first:
    #   leaves: 3, 4, 5 ; node 1 <- (3,4) ; node 2 <- (5) [one missing child] ; root 0 <- (1,2)
    n_nodes = 6
    levels = [np.array([3, 4, 5]), np.array([1, 2]), np.array([0])]
    children = {1: [3, 4], 2: [5], 0: [1, 2]}

    key = jax.random.PRNGKey(0)
    k_x, k_w, k_wb, k_u, k_ub = jax.random.split(key, 5)
    x = jax.random.normal(k_x, (n_nodes, x_size), jnp.float32)

    # Deterministic parameter init (PyTorch nn.Linear-style uniform bounds), stored as
    # pre-transposed W^T / U^T so y = x @ W^T + b matches torch semantics.
    bw = 1.0 / np.sqrt(x_size)
    bu = 1.0 / np.sqrt(n_ary * h_size)
    w_t = jax.random.uniform(k_w, (x_size, 3 * h_size), jnp.float32, -bw, bw)
    w_b = jax.random.uniform(k_wb, (1, 3 * h_size), jnp.float32, -bw, bw)
    u_t = jax.random.uniform(k_u, (n_ary * h_size, 4 * h_size), jnp.float32, -bu, bu)
    u_b = jax.random.uniform(k_ub, (1, 4 * h_size), jnp.float32, -bu, bu)
    params = (w_t, w_b, u_t, u_b)

    h_out, c_out = single_forget_gate_tree_lstm_forward(
        x, params, levels, children, h_size=h_size, n_ary=n_ary)
    h_out = jax.block_until_ready(h_out)
    c_out = jax.block_until_ready(c_out)

    h_exp, c_exp = _reference_forward_np(
        np.asarray(x), tuple(np.asarray(p) for p in params), levels, children,
        h_size=h_size, n_ary=n_ary)
    np.testing.assert_allclose(np.asarray(h_out), h_exp, atol=1e-4, rtol=1e-4)
    np.testing.assert_allclose(np.asarray(c_out), c_exp, atol=1e-4, rtol=1e-4)

    print("KERNEL_OK")
</pallas_src>

<mosaic_0001>
module attributes {stable_mosaic.version = 11 : i64} {
  func.func @kernel(%arg0: i32, %arg1: memref<8x16xf32, #tpu.memory_space<vmem>>, %arg2: memref<16x384xf32, #tpu.memory_space<vmem>>, %arg3: memref<1x384xf32, #tpu.memory_space<vmem>>, %arg4: memref<8x128xf32, #tpu.memory_space<vmem>>, %arg5: memref<8x128xf32, #tpu.memory_space<vmem>>) attributes {dimension_semantics = [#tpu.dimension_semantics<parallel>], iteration_bounds = array<i64: 1>, scalar_prefetch = 0 : i64, scratch_operands = 0 : i64, tpu.core_type = #tpu.core_type<tc>, window_params = [{transform_indices = @transform_0, window_bounds = array<i64: 8, 16>}, {pipeline_mode = #tpu.pipeline_mode<synchronous>, transform_indices = @transform_1, window_bounds = array<i64: 16, 384>}, {pipeline_mode = #tpu.pipeline_mode<synchronous>, transform_indices = @transform_2, window_bounds = array<i64: 1, 384>}, {transform_indices = @transform_3, window_bounds = array<i64: 8, 128>}, {transform_indices = @transform_4, window_bounds = array<i64: 8, 128>}]} {
    %c0 = arith.constant 0 : index
    %c0_0 = arith.constant 0 : index
    %0 = vector.load %arg1[%c0, %c0_0] : memref<8x16xf32, #tpu.memory_space<vmem>>, vector<8x16xf32>
    %c0_1 = arith.constant 0 : index
    %c0_2 = arith.constant 0 : index
    %1 = vector.load %arg2[%c0_1, %c0_2] : memref<16x384xf32, #tpu.memory_space<vmem>>, vector<16x384xf32>
    %cst = arith.constant dense<0.000000e+00> : vector<8x384xf32>
    %2 = tpu.matmul %0, %1, %cst {dimension_numbers = #tpu.dot_dimension_numbers<[1], [0], [0], [1], [0, 0, 1, 1], [], []>, precision = #tpu.contract_precision<fp32>} : vector<8x16xf32>, vector<16x384xf32>, vector<8x384xf32> -> vector<8x384xf32>
    %c0_3 = arith.constant 0 : index
    %c0_4 = arith.constant 0 : index
    %3 = vector.load %arg3[%c0_3, %c0_4] : memref<1x384xf32, #tpu.memory_space<vmem>>, vector<1x384xf32>
    %4 = vector.broadcast %3 : vector<1x384xf32> to vector<8x384xf32>
    %5 = arith.addf %2, %4 : vector<8x384xf32>
    %6 = vector.extract_strided_slice %5 {offsets = [0, 0], sizes = [8, 128], strides = [1, 1]} : vector<8x384xf32> to vector<8x128xf32>
    %cst_5 = arith.constant 0.000000e+00 : f32
    %7 = vector.broadcast %cst_5 : f32 to vector<8x128xf32>
    %8 = arith.subf %7, %6 : vector<8x128xf32>
    %9 = math.exp %8 : vector<8x128xf32>
    %cst_6 = arith.constant 1.000000e+00 : f32
    %10 = vector.broadcast %cst_6 : f32 to vector<8x128xf32>
    %11 = arith.addf %10, %9 : vector<8x128xf32>
    %cst_7 = arith.constant 1.000000e+00 : f32
    %12 = vector.broadcast %cst_7 : f32 to vector<8x128xf32>
    %13 = arith.divf %12, %11 : vector<8x128xf32>
    %14 = vector.extract_strided_slice %5 {offsets = [0, 128], sizes = [8, 128], strides = [1, 1]} : vector<8x384xf32> to vector<8x128xf32>
    %cst_8 = arith.constant 0.000000e+00 : f32
    %15 = vector.broadcast %cst_8 : f32 to vector<8x128xf32>
    %16 = arith.subf %15, %14 : vector<8x128xf32>
    %17 = math.exp %16 : vector<8x128xf32>
    %cst_9 = arith.constant 1.000000e+00 : f32
    %18 = vector.broadcast %cst_9 : f32 to vector<8x128xf32>
    %19 = arith.addf %18, %17 : vector<8x128xf32>
    %cst_10 = arith.constant 1.000000e+00 : f32
    %20 = vector.broadcast %cst_10 : f32 to vector<8x128xf32>
    %21 = arith.divf %20, %19 : vector<8x128xf32>
    %22 = vector.extract_strided_slice %5 {offsets = [0, 256], sizes = [8, 128], strides = [1, 1]} : vector<8x384xf32> to vector<8x128xf32>
    %23 = math.tanh %22 : vector<8x128xf32>
    %24 = arith.mulf %13, %23 : vector<8x128xf32>
    %c0_11 = arith.constant 0 : index
    %c0_12 = arith.constant 0 : index
    %25 = vector.load %arg5[%c0_11, %c0_12] : memref<8x128xf32, #tpu.memory_space<vmem>>, vector<8x128xf32>
    tpu.vector_store %arg5[%c0_11, %c0_12], %24 {strides = array<i32>} : memref<8x128xf32, #tpu.memory_space<vmem>>, vector<8x128xf32>,
    %26 = math.tanh %24 : vector<8x128xf32>
    %27 = arith.mulf %21, %26 : vector<8x128xf32>
    %c0_13 = arith.constant 0 : index
    %c0_14 = arith.constant 0 : index
    %28 = vector.load %arg4[%c0_13, %c0_14] : memref<8x128xf32, #tpu.memory_space<vmem>>, vector<8x128xf32>
    tpu.vector_store %arg4[%c0_13, %c0_14], %27 {strides = array<i32>} : memref<8x128xf32, #tpu.memory_space<vmem>>, vector<8x128xf32>,
    return
  }
  func.func @transform_0(%arg0: i32) -> (i32, i32) {
    %c0_i32 = arith.constant 0 : i32
    %c0_i32_0 = arith.constant 0 : i32
    return %arg0, %c0_i32 : i32, i32
  }
  func.func @transform_1(%arg0: i32) -> (i32, i32) {
    %c0_i32 = arith.constant 0 : i32
    %c0_i32_0 = arith.constant 0 : i32
    %c0_i32_1 = arith.constant 0 : i32
    return %c0_i32, %c0_i32_0 : i32, i32
  }
  func.func @transform_2(%arg0: i32) -> (i32, i32) {
    %c0_i32 = arith.constant 0 : i32
    %c0_i32_0 = arith.constant 0 : i32
    %c0_i32_1 = arith.constant 0 : i32
    return %c0_i32, %c0_i32_0 : i32, i32
  }
  func.func @transform_3(%arg0: i32) -> (i32, i32) {
    %c0_i32 = arith.constant 0 : i32
    %c0_i32_0 = arith.constant 0 : i32
    return %arg0, %c0_i32 : i32, i32
  }
  func.func @transform_4(%arg0: i32) -> (i32, i32) {
    %c0_i32 = arith.constant 0 : i32
    %c0_i32_0 = arith.constant 0 : i32
    return %arg0, %c0_i32 : i32, i32
  }
}

</mosaic_0001>

<bundles_post_ra>
// kernel: tpu_custom_call.1
= control target key start
LH: loop header
LB: loop body
LE: loop exit
PB: predicated region body
PF: predicated region fallthrough
CT: control target
= control target key end

     0   :  { %10 = vsyncpa [#allocation3], 0  ;;  %s1467_s0 = inlined_call_operand.hbm [shape: f32[8,16], index: 0, kind: input, shape index: {}]   ;;  %s1468_s1 = inlined_call_operand.hbm [shape: f32[16,384], index: 1, kind: input, shape index: {}]   ;;  %s1469_s2 = inlined_call_operand.vmem [shape: f32[1,384], index: 2, kind: input, shape index: {}]   ;;  %s1470_s3 = inlined_call_operand.hbm [shape: f32[8,128], index: 3, kind: output, shape index: {0}]   ;;  %s1471_s4 = inlined_call_operand.hbm [shape: f32[8,128], index: 4, kind: output, shape index: {1}]  }
   0x1   :  { %11 = vsyncpa [#allocation6], 0 }
   0x2   :  { %12 = vsyncpa [#allocation4], 0 }
   0x3   :  { %13 = vsyncpa [#allocation9], 0  ;;  %s1312_s15 = smov [#allocation2]   ;;  %s1313_s17 = smov [#allocation5]  }
   0x4   :  { %s20_s16 = sshll.u32 %s1312_s15, 4  ;;  %s29_s18 = sshll.u32 %s1313_s17, 4  ;;  %s21_s16 = int_to_ptr.vmem [resolvable:$true] %s20_s16  ;;  %s1346_s18 = int_to_ptr.vmem [resolvable:$true] %s29_s18 }
   0x5   :  { %s1216_s21 = scalar_lea.hbm %s1467_s0, 128 }
   0x6   :  { %p1217_p0 = scmp.ne.s32.totalorder %s1467_s0, %s1216_s21  ;;  %p1220_p1 = scmp.lt.u32.totalorder %s1216_s21, %s1467_s0 }
   0x8   :  { %p1222_p2 = pnand %p1220_p1, %p1217_p0 }
   0xa   :  { %1225 = shalt.err (!%p1222_p2)
}
   0xb   :  { %s1226_s26 = scalar_lea.vmem %s21_s16, 128  ;;  %p1231_p4 = scmp.lt.s32.totalorder %s21_s16, %s21_s16 }
   0xc   :  { %p1227_p3 = scmp.ne.s32.totalorder %s21_s16, %s1226_s26  ;;  %p1232_p5 = scmp.lt.s32.totalorder %s1226_s26, %s1226_s26 }
   0xe   :  { %p1233_p6 = por %p1232_p5, %p1231_p4 }
  0x10   :  { %p1234_p7 = pnand %p1233_p6, %p1227_p3 }
  0x12   :  { %1237 = shalt.err (!%p1234_p7)
}
  0x13   :  { %23 = dma.hbm_to_vmem [thread:$0]  %s1467_s0, 128, %s21_s16, [#allocation3]  }
  0x14   :  { %s1238_s5 = scalar_lea.hbm %s1468_s1, 768 }
  0x15   :  { %p1239_p8 = scmp.ne.s32.totalorder %s1468_s1, %s1238_s5  ;;  %p1242_p9 = scmp.lt.u32.totalorder %s1238_s5, %s1468_s1 }
  0x17   :  { %p1244_p10 = pnand %p1242_p9, %p1239_p8 }
  0x19   :  { %1247 = shalt.err (!%p1244_p10)
}
  0x1a   :  { %s1248_s10 = scalar_lea.vmem %s1346_s18, 768  ;;  %p1253_p12 = scmp.lt.s32.totalorder %s1346_s18, %s1346_s18 }
  0x1b   :  { %p1249_p11 = scmp.ne.s32.totalorder %s1346_s18, %s1248_s10  ;;  %p1254_p13 = scmp.lt.s32.totalorder %s1248_s10, %s1248_s10 }
  0x1d   :  { %p1255_p0 = por %p1254_p13, %p1253_p12 }
  0x1f   :  { %p1256_p1 = pnand %p1255_p0, %p1249_p11 }
  0x21   :  { %1259 = shalt.err (!%p1256_p1)
}
  0x22   :  { %s1314_s0 = smov 384   ;;  %s1315_s11 = smov 24  }
  0x23   :  { %35 = dma.hbm_to_vmem [thread:$0]  %s1468_s1, 768, %s1346_s18, [#allocation6], %s1314_s0, %s1314_s0, %s1315_s11  }
  0x24   :  { %1304 = dma.done.wait [#allocation3], 128  }
  0x25   :  { %1305 = vsyncadd [#allocation3], 4294967168 }
  0x26   :  { %1306 = dma.done.wait [#allocation6], 768  }
  0x27   :  { %1307 = vsyncadd [#allocation6], 4294966528  ;;  %v1316_v0 = vmov 0.0|0.0   ;;  %v1317_v1 = vmov 0.0   ;;  %vm1318_vm0 = vmmov 0   ;;  %v46_v2 = vld [vmem:[#allocation5 + $0x8] sm:$0xff]  ;;  %v53_v57 = vlaneseq }
  0x28   :  { %1154 = vmatprep.subr.bf16.mxu1 %v1316_v0  ;;  %140 = vmatprep.mubr.f32.mxu0 %v1317_v1  ;;  %v49_v3 = vld [vmem:[#allocation5 + $0x20] sm:$0xff]  ;;  %v72_v5 = vand.u32 4294901760, %v46_v2  ;;  %v48_v7 = vld [vmem:[#allocation5 + $0x18] sm:$0xff]  ;;  %v47_v9 = vld [vmem:[#allocation5 + $0x10] sm:$0xff]  ;;  %vm68_vm1 = vcmask 130048  }
  0x29   :  { %1092 = vmatprep.mubr.msk.f32.mxu1 %vm1318_vm0, %v1317_v1  ;;  %v45_v4 = vld [vmem:[#allocation5] sm:$0xff]  ;;  %v76_v6 = vand.u32 4294901760, %v49_v3  ;;  %v50_v10 = vld [vmem:[#allocation5 + $0x28] sm:$0xff]  ;;  %v78_v11 = vand.u32 4294901760, %v48_v7  ;;  %v564_v12 = vand.u32 4294901760, %v47_v9  ;;  %v44_v14 = vld [vmem:[#allocation2] sm:$0xff] }
  0x2a   :  { %v74_v8 = vand.u32 4294901760, %v45_v4  ;;  %v567_v13 = vand.u32 4294901760, %v50_v10  ;;  %v153_v16 = vsub.f32 %v46_v2, %v72_v5  ;;  %v70_v24 = vsel %vm68_vm1, %v44_v14, 0  ;;  %v51_v60 = vld [vmem:[%s1469_s2] sm:$0x7]  ;;  %s1319_s2 = smov [#allocation8]  }
  0x2b   :  { %v1381_v15 = vpack.c.bf16 %v76_v6, %v72_v5  ;;  %v165_v17 = vsub.f32 %v49_v3, %v76_v6  ;;  %v1387_v20 = vsub.f32 %v48_v7, %v78_v11  ;;  %v1391_v22 = vsub.f32 %v47_v9, %v564_v12  ;;  %s1056_s15 = sshll.u32 %s1319_s2, 4  ;;  %s1057_s15 = int_to_ptr.vmem [resolvable:$true] %s1056_s15 }
  0x2c   :  { %v1383_v18 = vsub.f32 %v45_v4, %v74_v8  ;;  %v1385_v19 = vpack.c.bf16 %v78_v11, %v74_v8  ;;  %v1389_v21 = vpack.c.bf16 %v567_v13, %v564_v12  ;;  %v649_v23 = vsub.f32 %v50_v10, %v567_v13  ;;  %s1260_s16 = scalar_lea.vmem %s1057_s15, 128  ;;  %p1265_p3 = scmp.lt.s32.totalorder %s1057_s15, %s1057_s15 }
  0x2d   :  { %1131 = vmatprep.subr.bf16.mxu0 %v1381_v15  ;;  %v154_v25 = vand.u32 4294901760, %v153_v16  ;;  %v166_v26 = vand.u32 4294901760, %v165_v17  ;;  %v1396_v27 = vand.u32 4294901760, %v70_v24  ;;  %v172_v29 = vand.u32 4294901760, %v1387_v20  ;;  %p1261_p2 = scmp.ne.s32.totalorder %s1057_s15, %s1260_s16  ;;  %p1266_p4 = scmp.lt.s32.totalorder %s1260_s16, %s1260_s16 }
  0x2e   :  { %1133 = vmatpush1.bf16.msra.mxu0 %v1385_v19  ;;  %1156 = vmatpush3.bf16.msra.mxu1 %v1389_v21  ;;  %v160_v28 = vand.u32 4294901760, %v1383_v18  ;;  %v643_v30 = vand.u32 4294901760, %v1391_v22  ;;  %v650_v33 = vand.u32 4294901760, %v649_v23  ;;  %v1138_v51 = vpack.c.bf16 %v165_v17, %v153_v16 }
  0x2f   :  { %v155_v31 = vsub.f32 %v153_v16, %v154_v25  ;;  %v167_v32 = vsub.f32 %v165_v17, %v166_v26  ;;  %1157 = vmatprep.subr.bf16.mxu1 %v1316_v0  ;;  %v142_v34 = vsub.f32 %v70_v24, %v1396_v27  ;;  %v173_v36 = vsub.f32 %v1387_v20, %v172_v29  ;;  %p1267_p5 = por %p1266_p4, %p1265_p3 }
  0x30   :  { %v161_v35 = vsub.f32 %v1383_v18, %v160_v28  ;;  %v644_v37 = vsub.f32 %v1391_v22, %v643_v30  ;;  %v651_v40 = vsub.f32 %v649_v23, %v650_v33  ;;  %v1140_v52 = vpack.c.bf16 %v1387_v20, %v1383_v18 }
  0x31   :  { %v156_v38 = vand.u32 4294901760, %v155_v31  ;;  %v168_v39 = vand.u32 4294901760, %v167_v32  ;;  %v143_v41 = vand.u32 4294901760, %v142_v34  ;;  %v174_v43 = vand.u32 4294901760, %v173_v36  ;;  %p1268_p6 = pnand %p1267_p5, %p1261_p2 }
  0x32   :  { %v162_v42 = vand.u32 4294901760, %v161_v35  ;;  %v645_v44 = vand.u32 4294901760, %v644_v37  ;;  %v652_v46 = vand.u32 4294901760, %v651_v40  ;;  %v1161_v53 = vpack.c.bf16 %v649_v23, %v1391_v22 }
  0x33   :  { %v1134_v45 = vpack.c.bf16 %v168_v39, %v156_v38  ;;  %v144_v47 = vsub.f32 %v142_v34, %v143_v41  ;;  %v1146_v54 = vpack.c.bf16 %v166_v26, %v154_v25  ;;  %v1148_v55 = vpack.c.bf16 %v172_v29, %v160_v28 }
  0x34   :  { %v1136_v48 = vpack.c.bf16 %v174_v43, %v162_v42  ;;  %v1158_v49 = vpack.c.bf16 %v652_v46, %v645_v44  ;;  %v1167_v56 = vpack.c.bf16 %v650_v33, %v643_v30  ;;  %v54_v58 = vshrl.u32 %v53_v57, 7 }
  0x35   :  { %1135 = vmatprep.subr.bf16.mxu0 %v1134_v45  ;;  %v145_v50 = vand.u32 4294901760, %v144_v47 }
  0x36   :  { %v55_v59 = vsub.s32 0, %v54_v58  ;;  %v59_v61 = vsub.s32 1, %v54_v58  ;;  %v63_v8 = vsub.s32 2, %v54_v58 }
  0x37   :  { %146 = vmatmul.mubr.f32.vlgmr.msra.gmra.mrb[0].mxu0 %v145_v50  ;;  %1093 = vmatmul.mubr.f32.vlgmr.msra.gmra.mrb[0].mxu1 %v145_v50 }
  0x38   :  { %1137 = vmatpush1.bf16.msra.mxu0 %v1136_v48  ;;  %1159 = vmatpush3.bf16.msra.mxu1 %v1158_v49  ;;  %v56_v62 = vrot.slane %v51_v60, %v55_v59  ;;  %v60_v63 = vrot.slane %v51_v60, %v59_v61  ;;  %v64_v10 = vrot.slane %v51_v60, %v63_v8 }
  0x39   :  { %236 = vmatprep.mubr.f32.mxu0 %v1317_v1  ;;  %1099 = vmatprep.mubr.msk.f32.mxu1 %vm1318_vm0, %v1317_v1 }
  0x3a   :  { %1139 = vmatprep.subr.bf16.mxu0 %v1138_v51  ;;  %1160 = vmatprep.subr.bf16.mxu1 %v1316_v0 }
  0x3f   :  { %238 = vmatmul.mubr.f32.vlgmr.msra.gmra.mrb[0].mxu0 %v1396_v27  ;;  %1100 = vmatmul.mubr.f32.vlgmr.msra.gmra.mrb[0].mxu1 %v1396_v27 }
  0x40   :  { %1141 = vmatpush1.bf16.msra.mxu0 %v1140_v52  ;;  %1162 = vmatpush3.bf16.msra.mxu1 %v1161_v53 }
  0x41   :  { %316 = vmatprep.mubr.f32.mxu0 %v1317_v1  ;;  %1106 = vmatprep.mubr.msk.f32.mxu1 %vm1318_vm0, %v1317_v1 }
  0x42   :  { %1143 = vmatprep.subr.bf16.mxu0 %v1381_v15  ;;  %1163 = vmatprep.subr.bf16.mxu1 %v1316_v0 }
  0x47   :  { %319 = vmatmul.mubr.f32.vlgmr.msra.gmra.mrb[0].mxu0 %v142_v34  ;;  %1107 = vmatmul.mubr.f32.vlgmr.msra.gmra.mrb[0].mxu1 %v142_v34 }
  0x48   :  { %1145 = vmatpush1.bf16.msra.mxu0 %v1385_v19  ;;  %1165 = vmatpush3.bf16.msra.mxu1 %v1389_v21 }
  0x49   :  { %393 = vmatprep.mubr.f32.mxu0 %v1317_v1  ;;  %1113 = vmatprep.mubr.msk.f32.mxu1 %vm1318_vm0, %v1317_v1 }
  0x4a   :  { %1147 = vmatprep.subr.bf16.mxu0 %v1146_v54  ;;  %1166 = vmatprep.subr.bf16.mxu1 %v1316_v0 }
  0x4f   :  { %397 = vmatmul.mubr.f32.vlgmr.msra.gmra.mrb[0].mxu0 %v143_v41  ;;  %1114 = vmatmul.mubr.f32.vlgmr.msra.gmra.mrb[0].mxu1 %v143_v41 }
  0x50   :  { %1149 = vmatpush1.bf16.msra.mxu0 %v1148_v55  ;;  %1168 = vmatpush3.bf16.msra.mxu1 %v1167_v56 }
  0x51   :  { %479 = vmatprep.mubr.f32.mxu0 %v1317_v1  ;;  %1120 = vmatprep.mubr.msk.f32.mxu1 %vm1318_vm0, %v1317_v1 }
  0x52   :  { %1151 = vmatprep.subr.bf16.mxu0 %v1381_v15  ;;  %1169 = vmatprep.subr.bf16.mxu1 %v1316_v0 }
  0x57   :  { %481 = vmatmul.mubr.f32.vlgmr.msra.gmra.mrb[0].mxu0 %v1396_v27  ;;  %1121 = vmatmul.mubr.f32.vlgmr.msra.gmra.mrb[0].mxu1 %v1396_v27 }
  0x58   :  { %1153 = vmatpush1.bf16.msra.mxu0 %v1385_v19  ;;  %1171 = vmatpush3.bf16.msra.mxu1 %v1389_v21 }
  0x59   :  { %555 = vmatprep.mubr.f32.mxu0 %v1317_v1  ;;  %1127 = vmatprep.mubr.msk.f32.mxu1 %vm1318_vm0, %v1317_v1 }
  0x5f   :  { %557 = vmatmul.mubr.f32.vlgmr.msra.gmra.mrb[0].mxu0 %v1396_v27  ;;  %1128 = vmatmul.mubr.f32.vlgmr.msra.gmra.mrb[0].mxu1 %v1396_v27 }
 0x132   :  { %v558_v0 = vpop.f32.mrb[0].mxu0  ;;  %v1018_v2 = vpop.f32.mrb[0].mxu1 }
 0x133   :  { %v1172_v3 = vadd.f32 %v558_v0, %v56_v62  ;;  %v560_v4 = vpop.f32.mrb[1].mxu0  ;;  %v1129_v5 = vpop.f32.mrb[1].mxu1  ;;  %v1174_v12 = vadd.f32 %v1018_v2, %v64_v10 }
 0x134   :  { %v1173_v6 = vadd.f32 %v560_v4, %v60_v63 }
 0x135   :  { %v1022_v1 = vsub.f32 0.0, %v1172_v3 }
 0x136   :  { %v1028_v9 = vsub.f32 0.0, %v1173_v6 }
 0x137   :  { %v1023_v7 = vmul.f32 1.442695, %v1022_v1 }
 0x138   :  { %v1029_v11 = vmul.f32 1.442695, %v1028_v9 }
 0x139   :  { %1204 = vpow2.f32 %v1023_v7 }
 0x13a   :  { %1206 = vpow2.f32 %v1029_v11 }
 0x13b   :  { %1208 = vtanh.f32 %v1174_v12 }
 0x143   :  { %v1205_v13 = vpop.eup %1204 }
 0x144   :  { %v1025_v14 = vadd.f32 1.0, %v1205_v13  ;;  %v1207_v15 = vpop.eup %1206 }
 0x145   :  { %v1031_v16 = vadd.f32 1.0, %v1207_v15  ;;  %v1209_v17 = vpop.eup %1208 }
 0x146   :  { %1210 = vrcp.f32 %v1025_v14 }
 0x147   :  { %1212 = vrcp.f32 %v1031_v16 }
 0x150   :  { %v1211_v18 = vpop.eup %1210 }
 0x151   :  { %v1035_v19 = vmul.f32 %v1211_v18, %v1209_v17 }
 0x153   :  { %1214 = vtanh.f32 %v1035_v19  ;;  %1036 = vst [vmem:[#allocation8] sm:$0xff] %v1035_v19 }
 0x154   :  { %1271 = shalt.err (!%p1268_p6)
}
 0x155   :  { %s1272_s19 = scalar_lea.hbm %s1471_s4, 128 }
 0x156   :  { %p1273_p7 = scmp.ne.s32.totalorder %s1471_s4, %s1272_s19  ;;  %p1276_p8 = scmp.lt.u32.totalorder %s1272_s19, %s1471_s4 }
 0x158   :  { %p1278_p9 = pnand %p1276_p8, %p1273_p7 }
 0x15a   :  { %1281 = shalt.err (!%p1278_p9)
}
 0x15b   :  { %1059 = dma.vmem_to_hbm [thread:$0]  %s1057_s15, 128, %s1471_s4, [#allocation9]   ;;  %v1213_v20 = vpop.eup %1212 }
 0x15c   :  { %s1320_s26 = smov [#allocation7]  }
 0x15d   :  { %s1046_s27 = sshll.u32 %s1320_s26, 4  ;;  %v1215_v21 = vpop.eup %1214  ;;  %s1047_s27 = int_to_ptr.vmem [resolvable:$true] %s1046_s27 }
 0x15e   :  { %v1038_v22 = vmul.f32 %v1215_v21, %v1213_v20  ;;  %s1282_s28 = scalar_lea.vmem %s1047_s27, 128  ;;  %p1287_p11 = scmp.lt.s32.totalorder %s1047_s27, %s1047_s27 }
 0x15f   :  { %p1283_p10 = scmp.ne.s32.totalorder %s1047_s27, %s1282_s28  ;;  %p1288_p12 = scmp.lt.s32.totalorder %s1282_s28, %s1282_s28 }
 0x160   :  { %1039 = vst [vmem:[#allocation7] sm:$0xff] %v1038_v22 }
 0x161   :  { %p1289_p13 = por %p1288_p12, %p1287_p11 }
 0x163   :  { %p1290_p0 = pnand %p1289_p13, %p1283_p10 }
 0x165   :  { %1293 = shalt.err (!%p1290_p0)
}
 0x166   :  { %s1294_s5 = scalar_lea.hbm %s1470_s3, 128 }
 0x167   :  { %p1295_p1 = scmp.ne.s32.totalorder %s1470_s3, %s1294_s5  ;;  %p1298_p2 = scmp.lt.u32.totalorder %s1294_s5, %s1470_s3 }
 0x169   :  { %p1300_p3 = pnand %p1298_p2, %p1295_p1 }
 0x16b   :  { %1303 = shalt.err (!%p1300_p3)
}
 0x16c   :  { %1049 = dma.vmem_to_hbm [thread:$0]  %s1047_s27, 128, %s1470_s3, [#allocation4]  }
 0x16d   :  { %1308 = dma.done.wait [#allocation4], 128  }
 0x16e   :  { %1309 = vsyncadd [#allocation4], 4294967168 }
 0x16f   :  { %1310 = dma.done.wait [#allocation9], 128  }
 0x170   :  { %1311 = vsyncadd [#allocation9], 4294967168 }
 0x171   :  { %1066 = vsyncpa [#allocation3], 1 }
 0x172   :  { %1067 = vsyncpa [#allocation6], 1 }
 0x173   :  { %1068 = vsyncpa [#allocation4], 1 }
 0x174   :  { %1069 = vsyncpa [#allocation9], 1 }

</bundles_post_ra>
